<compile_context>
chip_gen: v7x
topology: tpu7x:2x2x1
jax: 0.10.0
libtpu: 0.0.40
codegen_flags: <defaults>
</compile_context>

<pallas_src>
import functools
import math

import jax
import jax.numpy as jnp
from jax.experimental import pallas as pl
from jax.experimental.pallas import tpu as pltpu

EPS = 1e-5                                  # BatchNorm1d default eps
_STATS_PARTS = 2                            # megacore split of the stats pass
_TARGET_BLOCK_BYTES = 3 * 1024 * 1024       # streamed block size (~3 MiB)
_MAX_TILE_ROWS = 8192
_FUSED_LIMIT_BYTES = 2 * 1024 * 1024        # folded f32 bytes for 1-pass path
_VMEM_LIMIT_BYTES = 32 * 1024 * 1024        # fits v5e/v6e/v7x VMEM budgets


def _round_up(a: int, b: int) -> int:
    return ((a + b - 1) // b) * b


def _cdiv(a: int, b: int) -> int:
    return -(-a // b)


def _sublane_multiple(dtype) -> int:
    itemsize = jnp.dtype(dtype).itemsize
    if itemsize >= 4:
        return 8
    if itemsize == 2:
        return 16
    return 32


def _lane_fold(hidden: int, rows: int) -> int:
    """Rows folded into lanes so the last dim becomes lcm(hidden, 128)."""
    fold = 128 // math.gcd(hidden, 128)
    if fold == 1 or fold > 16 or rows % fold != 0:
        return 1
    return fold


def _choose_tile_rows(rf: int, hf: int, itemsize: int, sub: int) -> int:
    rows = _TARGET_BLOCK_BYTES // max(1, hf * itemsize)
    rows = max(sub, (rows // sub) * sub)
    rows = min(rows, _MAX_TILE_ROWS)
    rows = min(rows, _round_up(rf, sub))
    return max(rows, sub)


# ---------------------------------------------------------------------------
# In-kernel helpers
# ---------------------------------------------------------------------------
def _finalize_stats(s, q, *, inv_n, hidden, fold):
    """(1, Hf) per-lane sums -> per-hidden mean / inv-std, tiled over folds."""
    if fold > 1:
        # Lane l holds stats for hidden unit (l % hidden); summing circular
        # lane rolls by k*hidden combines the fold replicas and leaves the
        # result already tiled across the fold groups (XLU work, off VALU).
        s_tot, q_tot = s, q
        for k in range(1, fold):
            s_tot = s_tot + pltpu.roll(s, shift=k * hidden, axis=1)
            q_tot = q_tot + pltpu.roll(q, shift=k * hidden, axis=1)
        s, q = s_tot, q_tot
    mean = s * inv_n
    # E[x^2] - E[x]^2 (biased, matches BatchNorm training); clamp >= 0 guards
    # against cancellation going slightly negative.
    var = jnp.maximum(q * inv_n - mean * mean, 0.0)
    rstd = jax.lax.rsqrt(var + EPS)
    return mean, rstd


def _dice_mix(x, mean, rstd, alpha):
    x_hat = (x - mean) * rstd
    p = 0.5 * (jnp.tanh(0.5 * x_hat) + 1.0)          # sigmoid, single EUP op
    return x * (p + alpha * (1.0 - p))               # == alpha*(1-p)*x + p*x


# ---------------------------------------------------------------------------
# Kernel A: fully fused single pass (input resident in VMEM).
# ---------------------------------------------------------------------------
def _dice_fused_kernel(x_ref, alpha_ref, o_ref, *, inv_n, hidden, fold):
    x = x_ref[...].astype(jnp.float32)
    s = jnp.sum(x, axis=0, keepdims=True)
    q = jnp.sum(x * x, axis=0, keepdims=True)
    mean, rstd = _finalize_stats(s, q, inv_n=inv_n, hidden=hidden, fold=fold)
    o_ref[...] = _dice_mix(x, mean, rstd, alpha_ref[...]).astype(o_ref.dtype)


# ---------------------------------------------------------------------------
# Kernel B1: streamed batch statistics (per-lane sum / sum-of-squares).
# Grid = (part, step); each part owns one resident (8, Hf) accumulator pair.
# ---------------------------------------------------------------------------
def _stats_kernel(x_ref, sum_ref, sq_ref, *, tile, rows, steps_per_part):
    part = pl.program_id(0)
    step = pl.program_id(1)

    @pl.when(step == 0)
    def _init():
        sum_ref[...] = jnp.zeros_like(sum_ref)
        sq_ref[...] = jnp.zeros_like(sq_ref)

    # Mask rows past the end of the array (partial tail block / clamped
    # duplicate block of the last part). The divisor stays the true row count.
    start = (part * steps_per_part + step) * tile
    x = x_ref[...].astype(jnp.float32)
    row_id = jax.lax.broadcasted_iota(jnp.int32, x.shape, 0)
    x = jnp.where(row_id < (rows - start), x, 0.0)

    # Accumulate into the full (8, Hf) tile: plain per-lane VALU adds, no
    # per-step cross-sublane reduction and no masked single-sublane store.
    xr = x.reshape(tile // 8, 8, x.shape[-1])
    sum_ref[...] += jnp.sum(xr, axis=0)
    sq_ref[...] += jnp.sum(xr * xr, axis=0)


# ---------------------------------------------------------------------------
# Kernel B2: streamed normalize + Dice mix. The stats finalize (fold-combine,
# mean, rsqrt) runs in-kernel once per block (a few Hf-wide ops, free on a
# memory-bound pass) so there is no XLA glue between the two pallas_calls.
# ---------------------------------------------------------------------------
def _dice_stream_kernel(x_ref, psum_ref, psq_ref, alpha_ref, o_ref, *,
                        inv_n, hidden, fold):
    s = jnp.sum(psum_ref[...], axis=0, keepdims=True)
    q = jnp.sum(psq_ref[...], axis=0, keepdims=True)
    mean, rstd = _finalize_stats(s, q, inv_n=inv_n, hidden=hidden, fold=fold)
    x = x_ref[...].astype(jnp.float32)
    o_ref[...] = _dice_mix(x, mean, rstd, alpha_ref[...]).astype(o_ref.dtype)


# ---------------------------------------------------------------------------
# Wrapper
# ---------------------------------------------------------------------------
@functools.partial(jax.jit, static_argnames=("dim", "fused_limit_bytes"))
def dice_forward(x, alpha, *, dim=2, fused_limit_bytes=_FUSED_LIMIT_BYTES):
    """Dice forward. x: [B, H] (dim==2) or [B, T, H] (dim==3); alpha: [H]."""
    assert dim in (2, 3)
    orig_shape = x.shape
    hidden = x.shape[-1]
    x2 = x.reshape(-1, hidden)
    rows = x2.shape[0]

    # Lane-dense fold: [rows, H] viewed as [rows/fold, H*fold] (free,
    # contiguous reshape) so the last dim is a multiple of 128.
    fold = _lane_fold(hidden, rows)
    hf = hidden * fold
    rf = rows // fold
    xf = x2.reshape(rf, hf)

    alpha_f = alpha.astype(jnp.float32).reshape(1, hidden)
    if fold > 1:
        alpha_f = jnp.tile(alpha_f, (1, fold))
    inv_n = 1.0 / float(rows)
    kernel_kwargs = dict(inv_n=inv_n, hidden=hidden, fold=fold)

    if rf * hf * 4 <= fused_limit_bytes:
        # ---- single fused pass: x read from HBM exactly once --------------
        out_f = pl.pallas_call(
            functools.partial(_dice_fused_kernel, **kernel_kwargs),
            out_shape=jax.ShapeDtypeStruct((rf, hf), x.dtype),
            grid=(1,),
            in_specs=[pl.BlockSpec((rf, hf), lambda i: (0, 0)),
                      pl.BlockSpec((1, hf), lambda i: (0, 0))],
            out_specs=pl.BlockSpec((rf, hf), lambda i: (0, 0)),
            compiler_params=pltpu.CompilerParams(
                vmem_limit_bytes=_VMEM_LIMIT_BYTES),
        )(xf, alpha_f)
        return out_f.reshape(orig_shape)

    # ---- two streamed passes (x too large for VMEM residency) --------------
    itemsize = jnp.dtype(x.dtype).itemsize
    sub = _sublane_multiple(x.dtype)
    tile = _choose_tile_rows(rf, hf, itemsize, sub)
    nblocks = _cdiv(rf, tile)
    parts = min(_STATS_PARTS, nblocks)      # 2-way split feeds both TCs on v7x
    spp = _cdiv(nblocks, parts)

    def x_stats_map(p, i):
        # Clamp so padded grid steps of the last part stay in bounds; those
        # steps are fully masked inside the kernel.
        return (jnp.minimum(p * spp + i, nblocks - 1), 0)

    psum, psq = pl.pallas_call(
        functools.partial(_stats_kernel, tile=tile, rows=rf,
                          steps_per_part=spp),
        out_shape=(jax.ShapeDtypeStruct((parts * 8, hf), jnp.float32),
                   jax.ShapeDtypeStruct((parts * 8, hf), jnp.float32)),
        grid_spec=pltpu.PrefetchScalarGridSpec(
            num_scalar_prefetch=0,
            grid=(parts, spp),
            in_specs=[pl.BlockSpec((tile, hf), x_stats_map)],
            out_specs=(pl.BlockSpec((8, hf), lambda p, i: (p, 0)),
                       pl.BlockSpec((8, hf), lambda p, i: (p, 0)))),
        compiler_params=pltpu.CompilerParams(
            dimension_semantics=("parallel", "arbitrary"),
            vmem_limit_bytes=_VMEM_LIMIT_BYTES),
    )(xf)

    out_f = pl.pallas_call(
        functools.partial(_dice_stream_kernel, **kernel_kwargs),
        out_shape=jax.ShapeDtypeStruct((rf, hf), x.dtype),   # exact size: tail
        grid_spec=pltpu.PrefetchScalarGridSpec(               # writes dropped
            num_scalar_prefetch=0,
            grid=(nblocks,),
            in_specs=[pl.BlockSpec((tile, hf), lambda i: (i, 0)),
                      pl.BlockSpec((parts * 8, hf), lambda i: (0, 0)),
                      pl.BlockSpec((parts * 8, hf), lambda i: (0, 0)),
                      pl.BlockSpec((1, hf), lambda i: (0, 0))],
            out_specs=pl.BlockSpec((tile, hf), lambda i: (i, 0))),
        compiler_params=pltpu.CompilerParams(
            dimension_semantics=("parallel",),
            vmem_limit_bytes=_VMEM_LIMIT_BYTES),
    )(xf, psum, psq, alpha_f)

    return out_f.reshape(orig_shape)


# ---------------------------------------------------------------------------
# Pure-JAX reference (BatchNorm1d training-mode semantics, affine=False)
# ---------------------------------------------------------------------------
def dice_reference(x, alpha):
    hidden = x.shape[-1]
    x2 = x.reshape(-1, hidden).astype(jnp.float32)
    mean = jnp.mean(x2, axis=0, keepdims=True)
    var = jnp.mean((x2 - mean) ** 2, axis=0, keepdims=True)
    x_hat = (x2 - mean) / jnp.sqrt(var + EPS)
    p = jax.nn.sigmoid(x_hat)
    out = alpha.reshape(1, hidden) * (1.0 - p) * x2 + p * x2
    return out.reshape(x.shape).astype(x.dtype)


def _check(out, ref, name):
    assert out.shape == ref.shape, name
    assert bool(jnp.allclose(out, ref, atol=2e-5, rtol=2e-5)), name


if __name__ == "__main__":
    key = jax.random.PRNGKey(0)
    k1, k2, k3, k4, k5, k6, k7, k8 = jax.random.split(key, 8)
    hidden = 32

    # 1) dim == 3, alpha zeroed exactly like Dice.reset_parameters(); fused.
    alpha0 = jnp.zeros((hidden,), jnp.float32)
    x3 = jax.random.normal(k1, (4, 8, hidden), jnp.float32)
    out3 = jax.block_until_ready(dice_forward(x3, alpha0, dim=3))
    _check(out3, dice_reference(x3, alpha0), "dim3-fused")

    # 2) dim == 2, non-trivial alpha; fused path.
    alpha_r = jax.random.normal(k2, (hidden,), jnp.float32)
    x2d = jax.random.normal(k3, (16, hidden), jnp.float32)
    out2 = jax.block_until_ready(dice_forward(x2d, alpha_r, dim=2))
    _check(out2, dice_reference(x2d, alpha_r), "dim2-fused")

    # 3) streamed two-pass path (forced), lane-folded, partial tail block.
    xs = jax.random.normal(k4, (1000, hidden), jnp.float32)
    outs = jax.block_until_ready(
        dice_forward(xs, alpha_r, dim=2, fused_limit_bytes=0))
    _check(outs, dice_reference(xs, alpha_r), "streamed-fold")

    # 4) streamed path, hidden=96 with a row count that cannot be folded.
    alpha96 = jax.random.normal(k5, (96,), jnp.float32)
    xu = jax.random.normal(k6, (250, 96), jnp.float32)
    outu = jax.block_until_ready(
        dice_forward(xu, alpha96, dim=2, fused_limit_bytes=0))
    _check(outu, dice_reference(xu, alpha96), "streamed-nofold")

    # 5) streamed path, hidden=96 folded to Hf=384 (multi-vreg lane rows).
    xg = jax.random.normal(k7, (248, 96), jnp.float32)
    outg = jax.block_until_ready(
        dice_forward(xg, alpha96, dim=2, fused_limit_bytes=0))
    _check(outg, dice_reference(xg, alpha96), "streamed-fold96")

    # 6) streamed path chosen automatically (> fused limit): multiple row
    #    blocks, 2-part stats split, partial last block in both passes.
    xl = jax.random.normal(k8, (25000, hidden), jnp.float32)
    outl = jax.block_until_ready(dice_forward(xl, alpha_r, dim=2))
    _check(outl, dice_reference(xl, alpha_r), "streamed-large")

    print("KERNEL_OK")
</pallas_src>

<mosaic_0001>
module attributes {stable_mosaic.version = 11 : i64} {
  func.func @_dice_fused_kernel(%arg0: i32, %arg1: memref<8x128xf32, #tpu.memory_space<vmem>>, %arg2: memref<1x128xf32, #tpu.memory_space<vmem>>, %arg3: memref<8x128xf32, #tpu.memory_space<vmem>>) attributes {dimension_semantics = [#tpu.dimension_semantics<arbitrary>], iteration_bounds = array<i64: 1>, scalar_prefetch = 0 : i64, scratch_operands = 0 : i64, tpu.core_type = #tpu.core_type<tc>, window_params = [{pipeline_mode = #tpu.pipeline_mode<synchronous>, transform_indices = @transform_0, window_bounds = array<i64: 8, 128>}, {pipeline_mode = #tpu.pipeline_mode<synchronous>, transform_indices = @transform_1, window_bounds = array<i64: 1, 128>}, {pipeline_mode = #tpu.pipeline_mode<synchronous>, transform_indices = @transform_2, window_bounds = array<i64: 8, 128>}]} {
    %c0 = arith.constant 0 : index
    %c0_0 = arith.constant 0 : index
    %0 = vector.load %arg1[%c0, %c0_0] : memref<8x128xf32, #tpu.memory_space<vmem>>, vector<8x128xf32>
    %cst = arith.constant dense<0.000000e+00> : vector<128xf32>
    %1 = vector.multi_reduction <add>, %0, %cst [0] : vector<8x128xf32> to vector<128xf32>
    %2 = vector.shape_cast %1 : vector<128xf32> to vector<1x128xf32>
    %3 = arith.mulf %0, %0 : vector<8x128xf32>
    %cst_1 = arith.constant dense<0.000000e+00> : vector<128xf32>
    %4 = vector.multi_reduction <add>, %3, %cst_1 [0] : vector<8x128xf32> to vector<128xf32>
    %5 = vector.shape_cast %4 : vector<128xf32> to vector<1x128xf32>
    %c32_i32 = arith.constant 32 : i32
    %6 = tpu.dynamic_rotate %2 by %c32_i32 dim 1 : vector<1x128xf32>, i32 -> vector<1x128xf32>
    %7 = arith.addf %2, %6 : vector<1x128xf32>
    %c32_i32_2 = arith.constant 32 : i32
    %8 = tpu.dynamic_rotate %5 by %c32_i32_2 dim 1 : vector<1x128xf32>, i32 -> vector<1x128xf32>
    %9 = arith.addf %5, %8 : vector<1x128xf32>
    %c64_i32 = arith.constant 64 : i32
    %10 = tpu.dynamic_rotate %2 by %c64_i32 dim 1 : vector<1x128xf32>, i32 -> vector<1x128xf32>
    %11 = arith.addf %7, %10 : vector<1x128xf32>
    %c64_i32_3 = arith.constant 64 : i32
    %12 = tpu.dynamic_rotate %5 by %c64_i32_3 dim 1 : vector<1x128xf32>, i32 -> vector<1x128xf32>
    %13 = arith.addf %9, %12 : vector<1x128xf32>
    %c96_i32 = arith.constant 96 : i32
    %14 = tpu.dynamic_rotate %2 by %c96_i32 dim 1 : vector<1x128xf32>, i32 -> vector<1x128xf32>
    %15 = arith.addf %11, %14 : vector<1x128xf32>
    %c96_i32_4 = arith.constant 96 : i32
    %16 = tpu.dynamic_rotate %5 by %c96_i32_4 dim 1 : vector<1x128xf32>, i32 -> vector<1x128xf32>
    %17 = arith.addf %13, %16 : vector<1x128xf32>
    %cst_5 = arith.constant 3.125000e-02 : f32
    %18 = vector.broadcast %cst_5 : f32 to vector<1x128xf32>
    %19 = arith.mulf %15, %18 : vector<1x128xf32>
    %cst_6 = arith.constant 3.125000e-02 : f32
    %20 = vector.broadcast %cst_6 : f32 to vector<1x128xf32>
    %21 = arith.mulf %17, %20 : vector<1x128xf32>
    %22 = arith.mulf %19, %19 : vector<1x128xf32>
    %23 = arith.subf %21, %22 : vector<1x128xf32>
    %cst_7 = arith.constant 0.000000e+00 : f32
    %24 = vector.broadcast %cst_7 : f32 to vector<1x128xf32>
    %25 = arith.maximumf %23, %24 : vector<1x128xf32>
    %cst_8 = arith.constant 9.99999974E-6 : f32
    %26 = vector.broadcast %cst_8 : f32 to vector<1x128xf32>
    %27 = arith.addf %25, %26 : vector<1x128xf32>
    %28 = math.rsqrt %27 : vector<1x128xf32>
    %c0_9 = arith.constant 0 : index
    %c0_10 = arith.constant 0 : index
    %29 = vector.load %arg2[%c0_9, %c0_10] : memref<1x128xf32, #tpu.memory_space<vmem>>, vector<1x128xf32>
    %30 = vector.broadcast %19 : vector<1x128xf32> to vector<8x128xf32>
    %31 = arith.subf %0, %30 : vector<8x128xf32>
    %32 = vector.broadcast %28 : vector<1x128xf32> to vector<8x128xf32>
    %33 = arith.mulf %31, %32 : vector<8x128xf32>
    %cst_11 = arith.constant 5.000000e-01 : f32
    %34 = vector.broadcast %cst_11 : f32 to vector<8x128xf32>
    %35 = arith.mulf %34, %33 : vector<8x128xf32>
    %36 = math.tanh %35 : vector<8x128xf32>
    %cst_12 = arith.constant 1.000000e+00 : f32
    %37 = vector.broadcast %cst_12 : f32 to vector<8x128xf32>
    %38 = arith.addf %36, %37 : vector<8x128xf32>
    %cst_13 = arith.constant 5.000000e-01 : f32
    %39 = vector.broadcast %cst_13 : f32 to vector<8x128xf32>
    %40 = arith.mulf %39, %38 : vector<8x128xf32>
    %cst_14 = arith.constant 1.000000e+00 : f32
    %41 = vector.broadcast %cst_14 : f32 to vector<8x128xf32>
    %42 = arith.subf %41, %40 : vector<8x128xf32>
    %43 = vector.broadcast %29 : vector<1x128xf32> to vector<8x128xf32>
    %44 = arith.mulf %43, %42 : vector<8x128xf32>
    %45 = arith.addf %40, %44 : vector<8x128xf32>
    %46 = arith.mulf %0, %45 : vector<8x128xf32>
    %c0_15 = arith.constant 0 : index
    %c0_16 = arith.constant 0 : index
    %47 = vector.load %arg3[%c0_15, %c0_16] : memref<8x128xf32, #tpu.memory_space<vmem>>, vector<8x128xf32>
    tpu.vector_store %arg3[%c0_15, %c0_16], %46 {strides = array<i32>} : memref<8x128xf32, #tpu.memory_space<vmem>>, vector<8x128xf32>,
    return
  }
  func.func @transform_0(%arg0: i32) -> (i32, i32) {
    %c0_i32 = arith.constant 0 : i32
    %c0_i32_0 = arith.constant 0 : i32
    %c0_i32_1 = arith.constant 0 : i32
    return %c0_i32, %c0_i32_0 : i32, i32
  }
  func.func @transform_1(%arg0: i32) -> (i32, i32) {
    %c0_i32 = arith.constant 0 : i32
    %c0_i32_0 = arith.constant 0 : i32
    %c0_i32_1 = arith.constant 0 : i32
    return %c0_i32, %c0_i32_0 : i32, i32
  }
  func.func @transform_2(%arg0: i32) -> (i32, i32) {
    %c0_i32 = arith.constant 0 : i32
    %c0_i32_0 = arith.constant 0 : i32
    %c0_i32_1 = arith.constant 0 : i32
    return %c0_i32, %c0_i32_0 : i32, i32
  }
}

</mosaic_0001>

<bundles_post_ra>
// kernel: dice_forward.1
= control target key start
LH: loop header
LB: loop body
LE: loop exit
PB: predicated region body
PF: predicated region fallthrough
CT: control target
= control target key end

     0   :  { %s88_s11 = smov 64   ;;  %s89_s12 = smov 32   ;;  %v51_v30 = vlaneseq  ;;  %s115_s0 = inlined_call_operand.vmem [shape: f32[8,128], index: 0, kind: input, shape index: {}]   ;;  %s116_s1 = inlined_call_operand.vmem [shape: f32[1,128], index: 1, kind: input, shape index: {}]   ;;  %s117_s2 = inlined_call_operand.vmem [shape: f32[8,128], index: 2, kind: output, shape index: {}]  }
   0x1   :  { %v11_v0 = vld [vmem:[%s115_s0] sm:$0xff]  ;;  %s90_s0 = smov 96  }
   0x2   :  { %v12_v1 = vrot.slane %v11_v0, 4  ;;  %v18_v2 = vmul.f32 %v11_v0, %v11_v0  ;;  %v52_v33 = vshrl.u32 %v51_v30, 7  ;;  %v80_v44 = vld [vmem:[%s116_s1] ss:$0 sm:$0xff] }
   0x4   :  { %v13_v3 = vadd.f32 %v12_v1, %v11_v0  ;;  %v19_v4 = vrot.slane %v18_v2, 4  ;;  %v53_v34 = vsub.s32 0, %v52_v33 }
   0x6   :  { %v14_v5 = vrot.slane %v13_v3, 2  ;;  %v20_v6 = vadd.f32 %v19_v4, %v18_v2 }
   0x8   :  { %v15_v7 = vadd.f32 %v14_v5, %v13_v3  ;;  %v21_v8 = vrot.slane %v20_v6, 2 }
   0xa   :  { %v16_v9 = vrot.slane %v15_v7, 1  ;;  %v22_v10 = vadd.f32 %v21_v8, %v20_v6 }
   0xc   :  { %v17_v11 = vadd.f32 %v16_v9, %v15_v7  ;;  %v23_v12 = vrot.slane %v22_v10, 1 }
   0xe   :  { %31 = vrot.lane.b32.xlu1 %v17_v11, %s88_s11  ;;  %25 = vrot.lane.b32.xlu0 %v17_v11, %s89_s12  ;;  %v24_v13 = vadd.f32 %v23_v12, %v22_v10 }
  0x12   :  { %34 = vrot.lane.b32.xlu1 %v24_v13, %s88_s11  ;;  %28 = vrot.lane.b32.xlu0 %v24_v13, %s89_s12 }
  0x16   :  { %40 = vrot.lane.b32.xlu1 %v24_v13, %s90_s0  ;;  %37 = vrot.lane.b32.xlu0 %v17_v11, %s90_s0 }
  0x80   :  { %v32_v14 = vpop.permute.xlu1 %31  ;;  %v26_v15 = vpop.permute.xlu0 %25 }
  0x81   :  { %v27_v16 = vadd.f32 %v26_v15, %v17_v11 }
  0x83   :  { %v33_v21 = vadd.f32 %v32_v14, %v27_v16 }
  0x84   :  { %v35_v17 = vpop.permute.xlu1 %34  ;;  %v29_v18 = vpop.permute.xlu0 %28 }
  0x85   :  { %v30_v19 = vadd.f32 %v29_v18, %v24_v13 }
  0x87   :  { %v36_v20 = vadd.f32 %v35_v17, %v30_v19 }
  0x88   :  { %v41_v22 = vpop.permute.xlu1 %40  ;;  %v38_v23 = vpop.permute.xlu0 %37 }
  0x89   :  { %v42_v24 = vadd.f32 %v41_v22, %v36_v20  ;;  %v39_v25 = vadd.f32 %v38_v23, %v33_v21 }
  0x8b   :  { %v43_v26 = vmul.f32 0.03125, %v39_v25  ;;  %v44_v27 = vmul.f32 0.03125, %v42_v24 }
  0x8d   :  { %v45_v28 = vmul.f32 %v43_v26, %v43_v26  ;;  %v54_v35 = vrot.slane %v43_v26, %v53_v34 }
  0x8f   :  { %v46_v29 = vsub.f32 %v44_v27, %v45_v28  ;;  %v55_v37 = vsub.f32 %v11_v0, %v54_v35 }
  0x91   :  { %v47_v31 = vmax.f32 %v46_v29, 0.0 }
  0x93   :  { %v48_v32 = vadd.f32 1e-05, %v47_v31 }
  0x95   :  { %84 = vrsqrt.f32 %v48_v32 }
  0x9f   :  { %v85_v36 = vpop.eup %84 }
  0xa0   :  { %v59_v38 = vrot.slane %v85_v36, %v53_v34 }
  0xa2   :  { %v60_v39 = vmul.f32 %v59_v38, %v55_v37 }
  0xa4   :  { %v61_v40 = vmul.f32 0.5, %v60_v39 }
  0xa6   :  { %86 = vtanh.f32 %v61_v40 }
  0xb0   :  { %v87_v41 = vpop.eup %86 }
  0xb1   :  { %v63_v42 = vadd.f32 1.0, %v87_v41 }
  0xb3   :  { %v64_v43 = vmul.f32 0.5, %v63_v42 }
  0xb5   :  { %v65_v45 = vsub.f32 1.0, %v64_v43 }
  0xb7   :  { %v72_v46 = vmul.f32 %v80_v44, %v65_v45 }
  0xb9   :  { %v73_v47 = vadd.f32 %v72_v46, %v64_v43 }
  0xbb   :  { %v74_v48 = vmul.f32 %v73_v47, %v11_v0 }
  0xbd   :  { %75 = vst [vmem:[%s117_s2] sm:$0xff] %v74_v48 }

</bundles_post_ra>
